<compile_context>
chip_gen: v7x
topology: tpu7x:2x2x1
jax: 0.10.0
libtpu: 0.0.40
codegen_flags: <defaults>
</compile_context>

<pallas_src>
import functools

import jax
import jax.numpy as jnp
from jax.experimental import pallas as pl
from jax.experimental.pallas import tpu as pltpu


def _round_up(x, m):
    return ((x + m - 1) // m) * m


# v7x has 2 TensorCores per chip; only CORE_PARALLEL actually shards the grid
# across them. On v5e/v6e (1 TC) plain PARALLEL is the right (no-op) choice.
_DEVICE_KIND = jax.devices()[0].device_kind.lower()
_BATCH_SEMANTICS = (pltpu.CORE_PARALLEL if "7" in _DEVICE_KIND else pltpu.PARALLEL,)


def _discriminator_kernel(cat_ref, w1_ref, w2_ref, b2_ref, out_ref):
    # fc1 (concat + bias fused): h[H, tb] = W1_aug[H, F_pad] @ cat_T[F_pad, tb].
    # bf16 operands, f32 accumulation on the MXU.
    h = jnp.dot(w1_ref[...], cat_ref[...], preferred_element_type=jnp.float32)
    h = jnp.maximum(h, 0.0)                                   # ReLU in f32 (VPU)

    # fc2 as VPU multiply + sublane reduction against the (H, 1) w2 column.
    # Result is already a lane-dense (1, tb) row -- no transpose, no N=1 matmul.
    z = jnp.sum(h * w2_ref[...], axis=0, keepdims=True)       # (1, tb) f32
    z = z + b2_ref[0]                                          # scalar from SMEM

    out_ref[...] = jax.nn.sigmoid(z).astype(out_ref.dtype)     # (1, tb)


@functools.partial(jax.jit, static_argnames=("block_b",))
def discriminator_forward(x, a, params, *, block_b=4096):
    """x: (B, state_dim) f32, a: (B, action_dim) f32 -> (B, 1) f32."""
    B, state_dim = x.shape
    action_dim = a.shape[1]
    F = state_dim + action_dim
    H = params["w1"].shape[1]

    in_dtype = jnp.bfloat16
    # +1 feature row of ones carries the fc1 bias; pad features to the bf16
    # sublane tile (16) so the activation slab is a full packed tile.
    f_pad = _round_up(F + 1, 16)

    # Feature-major activation slab: one (F_pad, B) array (concat fused,
    # ones-row for the bias, zero rows for padding). One-off layout plumbing,
    # tiny vs. per-step DMA/overhead costs.
    cat_t = jnp.concatenate(
        [x.T.astype(in_dtype),
         a.T.astype(in_dtype),
         jnp.ones((1, B), in_dtype),
         jnp.zeros((f_pad - F - 1, B), in_dtype)],
        axis=0)                                               # (F_pad, B)

    # Augmented fc1 weight: cols [0:F) = W1^T, col F = b1, remaining cols zero.
    w1_aug = jnp.concatenate(
        [params["w1"].T,
         params["b1"].reshape(H, 1),
         jnp.zeros((H, f_pad - F - 1), jnp.float32)],
        axis=1).astype(in_dtype)                              # (H, F_pad) bf16

    w2_col = params["w2"].reshape(H, 1).astype(jnp.float32)   # (H, 1) f32 (VPU)
    b2 = params["b2"].reshape(1).astype(jnp.float32)          # (1,) -> SMEM

    # Batch tile along lanes: multiple of 128, as big as block_b allows.
    tb = min(_round_up(B, 128), _round_up(block_b, 128))
    b_pad = _round_up(B, tb)
    if b_pad != B:
        cat_t = jnp.pad(cat_t, ((0, 0), (0, b_pad - B)))
    grid = (b_pad // tb,)

    # Advisory hint so XLA's scheduler can overlap this small custom call.
    cost = pl.CostEstimate(
        flops=2 * b_pad * f_pad * H + 2 * b_pad * H,
        transcendentals=2 * b_pad,
        bytes_accessed=(2 * b_pad * f_pad + 2 * H * f_pad + 4 * H
                        + 4 * b_pad + 4),
    )

    out = pl.pallas_call(
        _discriminator_kernel,
        out_shape=jax.ShapeDtypeStruct((1, b_pad), jnp.float32),
        grid=grid,
        in_specs=[
            # batch-tiled activation slab (double-buffered across grid steps)
            pl.BlockSpec((f_pad, tb), lambda i: (0, i)),
            # block-resident weights (constant block index -> fetched once)
            pl.BlockSpec((H, f_pad), lambda i: (0, 0)),
            pl.BlockSpec((H, 1), lambda i: (0, 0)),
            # scalar fc2 bias in SMEM
            pl.BlockSpec(memory_space=pltpu.MemorySpace.SMEM),
        ],
        out_specs=pl.BlockSpec((1, tb), lambda i: (0, i)),
        compiler_params=pltpu.CompilerParams(
            dimension_semantics=_BATCH_SEMANTICS),
        cost_estimate=cost,
    )(cat_t, w1_aug, w2_col, b2)

    return out.reshape(-1, 1)[:B]


def init_params(key, state_dim, hidden_dim, action_dim):
    """Deterministic init mirroring nn.Linear's uniform(-1/sqrt(fan_in), +...)."""
    in1 = state_dim + action_dim
    k1, k2, k3, k4 = jax.random.split(key, 4)
    lim1 = 1.0 / jnp.sqrt(jnp.float32(in1))
    lim2 = 1.0 / jnp.sqrt(jnp.float32(hidden_dim))
    return {
        # stored as (in, out): transpose of PyTorch's (out, in)
        "w1": jax.random.uniform(k1, (in1, hidden_dim), jnp.float32, -lim1, lim1),
        "b1": jax.random.uniform(k2, (1, hidden_dim), jnp.float32, -lim1, lim1),
        "w2": jax.random.uniform(k3, (hidden_dim, 1), jnp.float32, -lim2, lim2),
        "b2": jax.random.uniform(k4, (1, 1), jnp.float32, -lim2, lim2),
    }


def _reference_forward(x, a, params):
    cat = jnp.concatenate([x, a], axis=1)
    h = jnp.maximum(cat @ params["w1"] + params["b1"], 0.0)
    return jax.nn.sigmoid(h @ params["w2"] + params["b2"])


if __name__ == "__main__":
    # CartPole-v1: state_dim=4, action_dim=2 (one-hot actions), hidden_dim=128
    state_dim, action_dim, hidden_dim = 4, 2, 128

    key = jax.random.PRNGKey(0)
    k_params, k_x, k_a = jax.random.split(key, 3)
    params = init_params(k_params, state_dim, hidden_dim, action_dim)

    def make_inputs(batch, kx, ka):
        x = jax.random.normal(kx, (batch, state_dim), jnp.float32)
        a_idx = jax.random.randint(ka, (batch,), 0, action_dim)
        a = jax.nn.one_hot(a_idx, action_dim, dtype=jnp.float32)
        return x, a

    # bf16 fc1 inputs/weights with f32 accumulation -> tolerance vs f32 reference.
    TOL = 2e-2

    # Small toy case (single grid step).
    x, a = make_inputs(8, k_x, k_a)
    out = jax.block_until_ready(discriminator_forward(x, a, params))
    ref = _reference_forward(x, a, params)
    assert out.shape == (8, 1)
    assert float(jnp.max(jnp.abs(out - ref))) < TOL

    # Non-multiple batch exercising the padded / multi-step tiled grid path.
    k_x2, k_a2 = jax.random.split(k_x)
    x2, a2 = make_inputs(300, k_x2, k_a2)
    out2 = jax.block_until_ready(discriminator_forward(x2, a2, params, block_b=128))
    ref2 = _reference_forward(x2, a2, params)
    assert out2.shape == (300, 1)
    assert float(jnp.max(jnp.abs(out2 - ref2))) < TOL

    print("KERNEL_OK")
</pallas_src>

<mosaic_0001>
module attributes {stable_mosaic.version = 11 : i64} {
  func.func @_discriminator_kernel(%arg0: i32, %arg1: memref<16x128xbf16, #tpu.memory_space<vmem>>, %arg2: memref<128x16xbf16, #tpu.memory_space<vmem>>, %arg3: memref<128x1xf32, #tpu.memory_space<vmem>>, %arg4: memref<1xf32, #tpu.memory_space<smem>>, %arg5: memref<1x128xf32, #tpu.memory_space<vmem>>) attributes {dimension_semantics = [#tpu.dimension_semantics<parallel>], iteration_bounds = array<i64: 1>, scalar_prefetch = 0 : i64, scratch_operands = 0 : i64, tpu.core_type = #tpu.core_type<tc>, window_params = [{transform_indices = @transform_0, window_bounds = array<i64: 16, 128>}, {pipeline_mode = #tpu.pipeline_mode<synchronous>, transform_indices = @transform_1, window_bounds = array<i64: 128, 16>}, {pipeline_mode = #tpu.pipeline_mode<synchronous>, transform_indices = @transform_2, window_bounds = array<i64: 128, 1>}, {transform_indices = @transform_3, window_bounds = array<i64: 1>}, {transform_indices = @transform_4, window_bounds = array<i64: 1, 128>}]} {
    %c0 = arith.constant 0 : index
    %c0_0 = arith.constant 0 : index
    %0 = vector.load %arg2[%c0, %c0_0] : memref<128x16xbf16, #tpu.memory_space<vmem>>, vector<128x16xbf16>
    %c0_1 = arith.constant 0 : index
    %c0_2 = arith.constant 0 : index
    %1 = vector.load %arg1[%c0_1, %c0_2] : memref<16x128xbf16, #tpu.memory_space<vmem>>, vector<16x128xbf16>
    %cst = arith.constant dense<0.000000e+00> : vector<128x128xf32>
    %2 = tpu.matmul %0, %1, %cst {dimension_numbers = #tpu.dot_dimension_numbers<[1], [0], [0], [1], [0, 0, 1, 1], [], []>} : vector<128x16xbf16>, vector<16x128xbf16>, vector<128x128xf32> -> vector<128x128xf32>
    %cst_3 = arith.constant 0.000000e+00 : f32
    %3 = vector.broadcast %cst_3 : f32 to vector<128x128xf32>
    %4 = arith.maximumf %2, %3 : vector<128x128xf32>
    %c0_4 = arith.constant 0 : index
    %c0_5 = arith.constant 0 : index
    %5 = vector.load %arg3[%c0_4, %c0_5] : memref<128x1xf32, #tpu.memory_space<vmem>>, vector<128x1xf32>
    %6 = vector.broadcast %5 : vector<128x1xf32> to vector<128x128xf32>
    %7 = arith.mulf %4, %6 : vector<128x128xf32>
    %cst_6 = arith.constant dense<0.000000e+00> : vector<128xf32>
    %8 = vector.multi_reduction <add>, %7, %cst_6 [0] : vector<128x128xf32> to vector<128xf32>
    %9 = vector.shape_cast %8 : vector<128xf32> to vector<1x128xf32>
    %c0_7 = arith.constant 0 : index
    %10 = memref.load %arg4[%c0_7] : memref<1xf32, #tpu.memory_space<smem>>
    %11 = vector.broadcast %10 : f32 to vector<1x128xf32>
    %12 = arith.addf %9, %11 : vector<1x128xf32>
    %13 = arith.negf %12 : vector<1x128xf32>
    %14 = math.exp %13 : vector<1x128xf32>
    %cst_8 = arith.constant 1.000000e+00 : f32
    %15 = vector.broadcast %cst_8 : f32 to vector<1x128xf32>
    %16 = arith.addf %15, %14 : vector<1x128xf32>
    %17 = arith.divf %15, %16 : vector<1x128xf32>
    %c0_9 = arith.constant 0 : index
    %c0_10 = arith.constant 0 : index
    %18 = vector.load %arg5[%c0_9, %c0_10] : memref<1x128xf32, #tpu.memory_space<vmem>>, vector<1x128xf32>
    tpu.vector_store %arg5[%c0_9, %c0_10], %17 {strides = array<i32>} : memref<1x128xf32, #tpu.memory_space<vmem>>, vector<1x128xf32>,
    return
  }
  func.func @transform_0(%arg0: i32) -> (i32, i32) {
    %c0_i32 = arith.constant 0 : i32
    %c0_i32_0 = arith.constant 0 : i32
    return %c0_i32, %arg0 : i32, i32
  }
  func.func @transform_1(%arg0: i32) -> (i32, i32) {
    %c0_i32 = arith.constant 0 : i32
    %c0_i32_0 = arith.constant 0 : i32
    %c0_i32_1 = arith.constant 0 : i32
    return %c0_i32, %c0_i32_0 : i32, i32
  }
  func.func @transform_2(%arg0: i32) -> (i32, i32) {
    %c0_i32 = arith.constant 0 : i32
    %c0_i32_0 = arith.constant 0 : i32
    %c0_i32_1 = arith.constant 0 : i32
    return %c0_i32, %c0_i32_0 : i32, i32
  }
  func.func @transform_3(%arg0: i32) -> i32 {
    %c0_i32 = arith.constant 0 : i32
    %c0_i32_0 = arith.constant 0 : i32
    return %c0_i32 : i32
  }
  func.func @transform_4(%arg0: i32) -> (i32, i32) {
    %c0_i32 = arith.constant 0 : i32
    %c0_i32_0 = arith.constant 0 : i32
    return %c0_i32, %arg0 : i32, i32
  }
}

</mosaic_0001>

<bundles_post_ra>
// kernel: discriminator_forward.1
= control target key start
LH: loop header
LB: loop body
LE: loop exit
PB: predicated region body
PF: predicated region fallthrough
CT: control target
= control target key end

     0   :  { %v431_v1 = vmov 0   ;;  %vm83_vm0 = vcmask 130048   ;;  %s546_s0 = inlined_call_operand.vmem [shape: bf16[16,128], index: 0, kind: input, shape index: {}]   ;;  %s547_s1 = inlined_call_operand.vmem [shape: bf16[128,16], index: 1, kind: input, shape index: {}]   ;;  %s548_s2 = inlined_call_operand.vmem [shape: f32[128,1], index: 2, kind: input, shape index: {}]   ;;  %s549_s3 = inlined_call_operand.<no memory space> [shape: f32[1], index: 3, kind: input, shape index: {}]   ;;  %s550_s4 = inlined_call_operand.vmem [shape: f32[1,128], index: 4, kind: output, shape index: {}]  }
   0x1   :  { %v418_v0 = vld [vmem:[%s546_s0] sm:$0xff]   ;;  %416 = vset.pattern.permute.xlu0 %v431_v1  ;;  %417 = vset.pattern.permute.xlu1 %v431_v1  ;;  %v421_v4 = vld [vmem:[%s547_s1 + $0x8] sm:$0xff]   ;;  %v423_v6 = vld [vmem:[%s547_s1 + $0x10] sm:$0xff]  }
   0x2   :  { %v419_v2 = vld [vmem:[%s547_s1] sm:$0xff]   ;;  %395 = vmatprep.subr.bf16.mxu0 %v418_v0  ;;  %413 = vmatprep.subr.bf16.mxu1 %v418_v0  ;;  %v422_v5 = vld [vmem:[%s547_s1 + $0x28] sm:$0xff]   ;;  %v424_v7 = vld [vmem:[%s547_s1 + $0x30] sm:$0xff]  }
   0x3   :  { %v420_v3 = vld [vmem:[%s547_s1 + $0x20] sm:$0xff]   ;;  %396 = vmatpush3.bf16.msra.mxu0 %v418_v0  ;;  %414 = vmatpush3.bf16.msra.mxu1 %v418_v0  ;;  %v223_v9 = vld [vmem:[%s548_s2 + $0x10] sm:$0xff]  ;;  %v425_v10 = vld [vmem:[%s547_s1 + $0x18] sm:$0xff]  }
   0x4   :  { %397 = vmatprep.mubr.msk.bf16.mxu0 %vm83_vm0, %v419_v2  ;;  %405 = vmatprep.mubr.msk.bf16.mxu1 %vm83_vm0, %v420_v3  ;;  %v221_v8 = vld [vmem:[%s548_s2] sm:$0xff]  ;;  %v426_v11 = vld [vmem:[%s547_s1 + $0x38] sm:$0xff]   ;;  %v222_v12 = vld [vmem:[%s548_s2 + $0x8] sm:$0xff] }
   0x5   :  { %239 = vperm.xlu0 %416, %v221_v8   ;;  %249 = vperm.xlu1 %417, %v223_v9   ;;  %v224_v13 = vld [vmem:[%s548_s2 + $0x18] sm:$0xff]  ;;  %v225_v14 = vld [vmem:[%s548_s2 + $0x20] sm:$0xff]  ;;  %v226_v15 = vld [vmem:[%s548_s2 + $0x28] sm:$0xff] }
   0x6   :  { %398 = vmatmul.mubr.msk.bf16.vlgmr.msra.gmra.mrb[0].mxu0 %vm83_vm0, %v421_v4  ;;  %406 = vmatmul.mubr.msk.bf16.vlgmr.msra.gmra.mrb[0].mxu1 %vm83_vm0, %v422_v5  ;;  %v227_v16 = vld [vmem:[%s548_s2 + $0x30] sm:$0xff]  ;;  %v228_v17 = vld [vmem:[%s548_s2 + $0x38] sm:$0xff]  ;;  %v229_v18 = vld [vmem:[%s548_s2 + $0x40] sm:$0xff] }
   0x7   :  { %401 = vmatprep.mubr.msk.bf16.mxu0 %vm83_vm0, %v423_v6  ;;  %409 = vmatprep.mubr.msk.bf16.mxu1 %vm83_vm0, %v424_v7  ;;  %v230_v19 = vld [vmem:[%s548_s2 + $0x48] sm:$0xff]  ;;  %v231_v20 = vld [vmem:[%s548_s2 + $0x50] sm:$0xff]  ;;  %v232_v21 = vld [vmem:[%s548_s2 + $0x58] sm:$0xff] }
   0x8   :  { %v233_v22 = vld [vmem:[%s548_s2 + $0x60] sm:$0xff]  ;;  %v234_v23 = vld [vmem:[%s548_s2 + $0x68] sm:$0xff]  ;;  %v235_v24 = vld [vmem:[%s548_s2 + $0x70] sm:$0xff] }
   0x9   :  { %244 = vperm.xlu0 %416, %v222_v12   ;;  %254 = vperm.xlu1 %417, %v224_v13   ;;  %v236_v25 = vld [vmem:[%s548_s2 + $0x78] sm:$0xff] }
   0xd   :  { %259 = vperm.xlu0 %416, %v225_v14   ;;  %264 = vperm.xlu1 %417, %v226_v15  }
   0xe   :  { %402 = vmatmul.mubr.msk.bf16.gmra.mrb[4].mxu0 %vm83_vm0, %v425_v10  ;;  %410 = vmatmul.mubr.msk.bf16.gmra.mrb[4].mxu1 %vm83_vm0, %v426_v11 }
  0x11   :  { %269 = vperm.xlu0 %416, %v227_v16   ;;  %274 = vperm.xlu1 %417, %v228_v17  }
  0x15   :  { %279 = vperm.xlu0 %416, %v229_v18   ;;  %284 = vperm.xlu1 %417, %v230_v19  }
  0x19   :  { %289 = vperm.xlu0 %416, %v231_v20   ;;  %294 = vperm.xlu1 %417, %v232_v21  }
  0x1d   :  { %299 = vperm.xlu0 %416, %v233_v22   ;;  %304 = vperm.xlu1 %417, %v234_v23  }
  0x21   :  { %309 = vperm.xlu0 %416, %v235_v24   ;;  %314 = vperm.xlu1 %417, %v236_v25  }
  0x84   :  { %v240_v26 = vpop.permute.xlu0 %239  ;;  %v250_v27 = vpop.permute.xlu1 %249 }
  0x88   :  { %v245_v28 = vpop.permute.xlu0 %244  ;;  %v255_v29 = vpop.permute.xlu1 %254 }
  0x8c   :  { %v260_v30 = vpop.permute.xlu0 %259  ;;  %v265_v31 = vpop.permute.xlu1 %264 }
  0x90   :  { %v270_v46 = vpop.permute.xlu0 %269  ;;  %v275_v47 = vpop.permute.xlu1 %274 }
  0x94   :  { %v280_v1 = vpop.permute.xlu0 %279  ;;  %v285_v5 = vpop.permute.xlu1 %284 }
  0x98   :  { %v290_v12 = vpop.permute.xlu0 %289  ;;  %v295_v16 = vpop.permute.xlu1 %294 }
  0x9c   :  { %v300_v23 = vpop.permute.xlu0 %299 }
  0xd9   :  { %v399_v32 = vpop.f32.mrb[0].mxu0  ;;  %v407_v33 = vpop.f32.mrb[0].mxu1 }
  0xda   :  { %v142_v34 = vpop.f32.mrb[1].mxu0  ;;  %v174_v35 = vpop.f32.mrb[1].mxu1  ;;  %v207_v41 = vmax.f32 %v399_v32, 0.0  ;;  %v215_v13 = vmax.f32 %v407_v33, 0.0 }
  0xdb   :  { %v205_v36 = vmax.f32 %v142_v34, 0.0  ;;  %v400_v37 = vpop.f32.mrb[2].mxu0  ;;  %v408_v38 = vpop.f32.mrb[2].mxu1  ;;  %v213_v6 = vmax.f32 %v174_v35, 0.0 }
  0xdc   :  { %v145_v39 = vpop.f32.mrb[3].mxu0  ;;  %v177_v40 = vpop.f32.mrb[3].mxu1  ;;  %v208_v44 = vmax.f32 %v400_v37, 0.0  ;;  %v319_v48 = vmul.f32 %v250_v27, %v207_v41  ;;  %v216_v17 = vmax.f32 %v408_v38, 0.0  ;;  %v327_v20 = vmul.f32 %v290_v12, %v215_v13 }
  0xdd   :  { %v206_v42 = vmax.f32 %v145_v39, 0.0  ;;  %v317_v43 = vmul.f32 %v240_v26, %v205_v36  ;;  %v214_v9 = vmax.f32 %v177_v40, 0.0  ;;  %v325_v14 = vmul.f32 %v280_v1, %v213_v6  ;;  %v305_v27 = vpop.permute.xlu1 %304  ;;  %v310_v34 = vpop.permute.xlu0 %309 }
  0xde   :  { %v320_v54 = vmul.f32 %v255_v29, %v208_v44  ;;  %v328_v24 = vmul.f32 %v295_v16, %v216_v17 }
  0xdf   :  { %v318_v45 = vmul.f32 %v245_v28, %v206_v42  ;;  %v326_v18 = vmul.f32 %v285_v5, %v214_v9 }
  0xe1   :  { %v333_v49 = vadd.f32 %v318_v45, %v317_v43  ;;  %v403_v50 = vpop.f32.mrb[4].mxu0  ;;  %v411_v51 = vpop.f32.mrb[4].mxu1 }
  0xe2   :  { %v158_v52 = vpop.f32.mrb[5].mxu0  ;;  %v190_v53 = vpop.f32.mrb[5].mxu1  ;;  %v211_v61 = vmax.f32 %v403_v50, 0.0  ;;  %v219_v28 = vmax.f32 %v411_v51, 0.0 }
  0xe3   :  { %v334_v55 = vadd.f32 %v333_v49, %v319_v48  ;;  %v209_v56 = vmax.f32 %v158_v52, 0.0  ;;  %v404_v57 = vpop.f32.mrb[6].mxu0  ;;  %v412_v58 = vpop.f32.mrb[6].mxu1  ;;  %v217_v21 = vmax.f32 %v190_v53, 0.0 }
  0xe4   :  { %v161_v59 = vpop.f32.mrb[7].mxu0  ;;  %v193_v60 = vpop.f32.mrb[7].mxu1  ;;  %v212_v3 = vmax.f32 %v404_v57, 0.0  ;;  %v323_v7 = vmul.f32 %v270_v46, %v211_v61  ;;  %v331_v35 = vmul.f32 %v310_v34, %v219_v28  ;;  %v355_v46 = vstv %s549_s3 }
  0xe5   :  { %v321_v62 = vmul.f32 %v260_v30, %v209_v56  ;;  %v335_v63 = vadd.f32 %v334_v55, %v320_v54  ;;  %v210_v0 = vmax.f32 %v161_v59, 0.0  ;;  %v218_v25 = vmax.f32 %v193_v60, 0.0  ;;  %v315_v37 = vpop.permute.xlu1 %314 }
  0xe6   :  { %v324_v10 = vmul.f32 %v275_v47, %v212_v3  ;;  %v329_v29 = vmul.f32 %v300_v23, %v217_v21 }
  0xe7   :  { %v336_v2 = vadd.f32 %v335_v63, %v321_v62  ;;  %v322_v4 = vmul.f32 %v265_v31, %v210_v0  ;;  %v220_v31 = vmax.f32 %v412_v58, 0.0  ;;  %v330_v32 = vmul.f32 %v305_v27, %v218_v25 }
  0xe9   :  { %v337_v8 = vadd.f32 %v336_v2, %v322_v4  ;;  %v332_v38 = vmul.f32 %v315_v37, %v220_v31 }
  0xeb   :  { %v338_v11 = vadd.f32 %v337_v8, %v323_v7 }
  0xed   :  { %v339_v15 = vadd.f32 %v338_v11, %v324_v10 }
  0xef   :  { %v340_v19 = vadd.f32 %v339_v15, %v325_v14 }
  0xf1   :  { %v341_v22 = vadd.f32 %v340_v19, %v326_v18 }
  0xf3   :  { %v342_v26 = vadd.f32 %v341_v22, %v327_v20 }
  0xf5   :  { %v343_v30 = vadd.f32 %v342_v26, %v328_v24 }
  0xf7   :  { %v344_v33 = vadd.f32 %v343_v30, %v329_v29 }
  0xf9   :  { %v345_v36 = vadd.f32 %v344_v33, %v330_v32 }
  0xfb   :  { %v346_v39 = vadd.f32 %v345_v36, %v331_v35 }
  0xfd   :  { %v347_v40 = vadd.f32 %v346_v39, %v332_v38 }
  0xff   :  { %v348_v41 = vrot.slane %v347_v40, 4 }
 0x101   :  { %v349_v42 = vadd.f32 %v348_v41, %v347_v40 }
 0x103   :  { %v350_v43 = vrot.slane %v349_v42, 2 }
 0x105   :  { %v351_v44 = vadd.f32 %v350_v43, %v349_v42 }
 0x107   :  { %v352_v45 = vrot.slane %v351_v44, 1 }
 0x109   :  { %v353_v47 = vadd.f32 %v352_v45, %v351_v44 }
 0x10b   :  { %v356_v48 = vadd.f32 %v355_v46, %v353_v47 }
 0x10d   :  { %v385_v49 = vmul.f32 -1.442695, %v356_v48 }
 0x10f   :  { %427 = vpow2.f32 %v385_v49 }
 0x119   :  { %v428_v50 = vpop.eup %427 }
 0x11a   :  { %v360_v51 = vadd.f32 1.0, %v428_v50 }
 0x11c   :  { %429 = vrcp.f32 %v360_v51 }
 0x126   :  { %v430_v52 = vpop.eup %429 }
 0x127   :  { %363 = vst [vmem:[%s550_s4] sm:$0x1] %v430_v52 }

</bundles_post_ra>
